<compile_context>
chip_gen: v7x
topology: tpu7x:2x2x1
jax: 0.10.0
libtpu: 0.0.40
codegen_flags: <defaults>
</compile_context>

<pallas_src>
import functools

import jax
import jax.numpy as jnp
from jax import lax
from jax.experimental import pallas as pl
from jax.experimental.pallas import tpu as pltpu


def _round_up(x, m):
    return ((x + m - 1) // m) * m


def _vmem_budget_bytes():
    """Generation-aware VMEM budget (leave ~25% headroom under physical capacity)."""
    try:
        cap = pltpu.get_tpu_info().vmem_capacity_bytes   # 128 MiB v5e/v6e, 64 MiB v7x
    except Exception:
        cap = 64 * 1024 * 1024                           # conservative fallback (v7x)
    return int(cap * 3 // 4)


def _choose_tiles(channels, n_q, n_k, vmem_budget):
    """Pick lane-dense (multiple-of-128) query / key tile widths that fit VMEM."""
    tq = min(_round_up(n_q, 128), 256)
    tk = min(_round_up(n_k, 128), 512)

    def usage(tq_, tk_):
        nk_pad = _round_up(n_k, tk_)
        f32 = 4
        xq_blk = 2 * channels * tq_ * f32                 # double-buffered query tile
        xk_blk = 2 * channels * nk_pad * f32              # whole key block per batch elem
        out_blk = 2 * channels * tq_ * f32
        weights = 2 * (3 * channels * channels + 3 * channels) * f32
        live = (2 * channels * tq_ + 2 * channels * tk_ + 2 * tk_ * tq_
                + channels * tq_) * f32                   # q, kv, sim/p, acc (rough)
        return xq_blk + xk_blk + out_blk + weights + live

    while usage(tq, tk) > vmem_budget and tk > 128:
        tk //= 2
    while usage(tq, tk) > vmem_budget and tq > 128:
        tq //= 2
    return tq, tk


def _cross_attention_kernel(xq_ref, xk_ref, wq_ref, bq_ref, wkv_ref, bkv_ref, o_ref, *,
                            channels, tk, num_k_tiles, nk_valid, mxu_dtype,
                            approx_recip, unroll):
    """One (batch element, query tile) grid step.

    xq_ref: (C, tq)      query features (flattened spatial), channels-first
    xk_ref: (C, Nk_pad)  full key/value features for this batch element
    o_ref:  (C, tq)      context output (channels-first -> free reshape to NCHW)

    Flash-style: loop over key tiles with online softmax; only a (tk, tq) tile of
    the attention matrix is ever live.
    """
    C = channels
    tq = o_ref.shape[-1]
    neg_big = jnp.float32(-1e30)

    # Query projection (1x1 conv + folded BN + ReLU); C**-0.5 already folded into wq/bq.
    q = jnp.maximum(
        jnp.dot(wq_ref[...].astype(mxu_dtype), xq_ref[...].astype(mxu_dtype),
                preferred_element_type=jnp.float32) + bq_ref[...], 0.0)      # (C, tq)
    qc = q.astype(mxu_dtype)                  # hoisted cast (reused every key tile)
    wkv = wkv_ref[...].astype(mxu_dtype)      # hoisted cast
    bkv = bkv_ref[...]

    def body(j, carry):
        m, l, acc = carry
        start = pl.multiple_of(j * tk, tk)
        xk_t = xk_ref[:, pl.ds(start, tk)]                                   # (C, tk)
        # Fused K|V projection: one MXU matmul for both.
        kv = jnp.maximum(
            jnp.dot(wkv, xk_t.astype(mxu_dtype),
                    preferred_element_type=jnp.float32) + bkv, 0.0)          # (2C, tk)
        k = kv[:C]
        v = kv[C:]
        # sim[nk, nq] = sum_c k[c, nk] * q[c, nq]: keys on sublanes, queries on lanes.
        # All row-stats stay (1, tq) and the context comes out as (C, tq) directly,
        # so no (Nq, C) -> (C, Nq) transpose is ever needed (XLU relief).
        sim = lax.dot_general(k.astype(mxu_dtype), qc, (((0,), (0,)), ((), ())),
                              preferred_element_type=jnp.float32)            # (tk, tq)
        if nk_valid is not None:
            # Padded key columns must be masked: zero-padded xk still produces
            # ReLU(bias) != 0 after the projection, which would corrupt the softmax.
            key_idx = start + lax.broadcasted_iota(jnp.int32, (tk, 1), 0)
            sim = jnp.where(key_idx < nk_valid, sim, neg_big)
        m_new = jnp.maximum(m, jnp.max(sim, axis=0, keepdims=True))          # (1, tq)
        alpha = jnp.exp(m - m_new)                                           # (1, tq)
        p = jnp.exp(sim - m_new)                                             # (tk, tq)
        l_new = alpha * l + jnp.sum(p, axis=0, keepdims=True)
        acc_new = alpha * acc + jnp.dot(v.astype(mxu_dtype), p.astype(mxu_dtype),
                                        preferred_element_type=jnp.float32)  # (C, tq)
        return m_new, l_new, acc_new

    init = (jnp.full((1, tq), neg_big, jnp.float32),
            jnp.zeros((1, tq), jnp.float32),
            jnp.zeros((C, tq), jnp.float32))
    _, l, acc = lax.fori_loop(0, num_k_tiles, body, init, unroll=unroll)

    # Normalize after the PV matmul: one (1, tq) reciprocal instead of per-element divides.
    inv = pl.reciprocal(l, approx=True) if approx_recip else 1.0 / l
    o_ref[...] = (acc * inv).astype(o_ref.dtype)


def cross_attention_pallas(query_feats, key_feats, params, *,
                           mxu_dtype=jnp.bfloat16, approx_reciprocal=True):
    """query_feats, key_feats: NCHW float32.  Returns NCHW float32.

    mxu_dtype=jnp.bfloat16 uses the bf16-native MXU (f32 accumulation); pass
    mxu_dtype=jnp.float32 and approx_reciprocal=False for near-exact parity with
    the fp32 reference / PyTorch module.
    """
    B, C, Hq, Wq = query_feats.shape
    Bk, Ck, Hk, Wk = key_feats.shape
    assert Bk == B and Ck == C
    Nq, Nk = Hq * Wq, Hk * Wk

    eps = 1e-5

    def fold(w, gamma, beta, mean, var, extra_scale=1.0):
        # conv(1x1, no bias) + BN(eval):  y = (W x) * s + (beta - mean * s)
        s = gamma / jnp.sqrt(var + eps)                       # (C,)
        w_eff = (w * s[:, None]) * extra_scale                # (C_out, C_in)
        b_eff = ((beta - mean * s) * extra_scale)[:, None]    # (C_out, 1)
        return w_eff.astype(jnp.float32), b_eff.astype(jnp.float32)

    # Fold the C**-0.5 attention scale into the query projection
    # (valid: ReLU is positive-homogeneous).
    scale = float(C) ** (-0.5)
    wq_e, bq_e = fold(params["wq"], params["gq"], params["bq"],
                      params["mq"], params["vq"], extra_scale=scale)
    wk_e, bk_e = fold(params["wk"], params["gk"], params["bk"],
                      params["mk"], params["vk"])
    wv_e, bv_e = fold(params["wv"], params["gv"], params["bv"],
                      params["mv"], params["vv"])
    wkv_e = jnp.concatenate([wk_e, wv_e], axis=0)             # (2C, C)
    bkv_e = jnp.concatenate([bk_e, bv_e], axis=0)             # (2C, 1)

    vmem_limit = _vmem_budget_bytes()
    tq, tk = _choose_tiles(C, Nq, Nk, vmem_limit)
    nq_pad = _round_up(Nq, tq)
    nk_pad = _round_up(Nk, tk)
    num_k_tiles = nk_pad // tk

    # NCHW -> (B, C, N): free reshapes; pad N up to lane-dense tile multiples
    # (sub-128 lane widths would force masked vst.msk partial stores).
    xq = query_feats.reshape(B, C, Nq)
    xk = key_feats.reshape(B, C, Nk)
    if nq_pad != Nq:
        xq = jnp.pad(xq, ((0, 0), (0, 0), (0, nq_pad - Nq)))
    if nk_pad != Nk:
        xk = jnp.pad(xk, ((0, 0), (0, 0), (0, nk_pad - Nk)))

    kernel = functools.partial(
        _cross_attention_kernel, channels=C, tk=tk, num_k_tiles=num_k_tiles,
        nk_valid=(Nk if nk_pad != Nk else None), mxu_dtype=mxu_dtype,
        approx_recip=approx_reciprocal, unroll=(num_k_tiles <= 4))

    const2 = lambda b, qi: (0, 0)
    # Weight blocks have a constant index map, so they are DMA'd only once; their
    # default double-buffer footprint is negligible at these sizes.
    out = pl.pallas_call(
        kernel,
        out_shape=jax.ShapeDtypeStruct((B, C, nq_pad), jnp.float32),
        grid_spec=pltpu.PrefetchScalarGridSpec(
            num_scalar_prefetch=0,
            grid=(B, nq_pad // tq),
            in_specs=[
                pl.BlockSpec((None, C, tq), lambda b, qi: (b, 0, qi)),       # query tile
                pl.BlockSpec((None, C, nk_pad), lambda b, qi: (b, 0, 0)),    # full keys
                pl.BlockSpec((C, C), const2),
                pl.BlockSpec((C, 1), const2),
                pl.BlockSpec((2 * C, C), const2),
                pl.BlockSpec((2 * C, 1), const2),
            ],
            out_specs=pl.BlockSpec((None, C, tq), lambda b, qi: (b, 0, qi)),
        ),
        compiler_params=pltpu.CompilerParams(
            dimension_semantics=("parallel", "parallel"),
            vmem_limit_bytes=vmem_limit),
    )(xq, xk, wq_e, bq_e, wkv_e, bkv_e)

    if nq_pad != Nq:
        out = out[:, :, :Nq]
    # (B, C, Nq) -> (B, C, Hq, Wq): free reshape.
    return out.reshape(B, C, Hq, Wq)


def cross_attention_ref(query_feats, key_feats, params):
    """Pure-JAX fp32 reference matching the PyTorch module (eval-mode BN)."""
    B, C, Hq, Wq = query_feats.shape
    Nq = Hq * Wq
    Nk = key_feats.shape[2] * key_feats.shape[3]
    eps = 1e-5
    hp = lax.Precision.HIGHEST

    def proj(x, w, g, b, m, v):
        y = jnp.einsum("oc,bchw->bohw", w, x, precision=hp)
        s = g / jnp.sqrt(v + eps)
        y = y * s[None, :, None, None] + (b - m * s)[None, :, None, None]
        return jnp.maximum(y, 0.0)

    q = proj(query_feats, params["wq"], params["gq"], params["bq"], params["mq"], params["vq"])
    k = proj(key_feats, params["wk"], params["gk"], params["bk"], params["mk"], params["vk"])
    v = proj(key_feats, params["wv"], params["gv"], params["bv"], params["mv"], params["vv"])

    q = jnp.transpose(q.reshape(B, C, Nq), (0, 2, 1))        # (B, Nq, C)
    k = k.reshape(B, C, Nk)                                  # (B, C, Nk)
    v = jnp.transpose(v.reshape(B, C, Nk), (0, 2, 1))        # (B, Nk, C)

    sim = jnp.einsum("bqc,bck->bqk", q, k, precision=hp) * (float(C) ** -0.5)
    sim = jax.nn.softmax(sim, axis=-1)
    ctx = jnp.einsum("bqk,bkc->bqc", sim, v, precision=hp)   # (B, Nq, C)
    return jnp.transpose(ctx, (0, 2, 1)).reshape(B, C, Hq, Wq)


if __name__ == "__main__":
    B, C, H, W = 2, 32, 8, 8
    key = jax.random.PRNGKey(0)
    k0, k1, k2, k3, k4 = jax.random.split(key, 5)

    query_feats = jax.random.normal(k0, (B, C, H, W), dtype=jnp.float32)
    key_feats = jax.random.normal(k1, (B, C, H, W), dtype=jnp.float32)

    # Conv2d 1x1 weights (C_out, C_in); BN params at PyTorch defaults.
    params = {
        "wq": jax.random.normal(k2, (C, C), dtype=jnp.float32) * (C ** -0.5),
        "wk": jax.random.normal(k3, (C, C), dtype=jnp.float32) * (C ** -0.5),
        "wv": jax.random.normal(k4, (C, C), dtype=jnp.float32) * (C ** -0.5),
    }
    for p in ("q", "k", "v"):
        params[f"g{p}"] = jnp.ones((C,), jnp.float32)    # BN gamma
        params[f"b{p}"] = jnp.zeros((C,), jnp.float32)   # BN beta
        params[f"m{p}"] = jnp.zeros((C,), jnp.float32)   # running_mean
        params[f"v{p}"] = jnp.ones((C,), jnp.float32)    # running_var

    ref = jax.block_until_ready(cross_attention_ref(query_feats, key_feats, params))

    # Fast path (default): bf16 MXU operands (f32 accumulation) + approx reciprocal.
    # Tolerance covers bf16 operand rounding (~0.4% rel per op) + approx reciprocal.
    out = jax.block_until_ready(cross_attention_pallas(query_feats, key_feats, params))
    assert out.shape == (B, C, H, W), out.shape
    assert jnp.allclose(out, ref, atol=5e-2, rtol=5e-2), float(jnp.max(jnp.abs(out - ref)))

    # Exact path: fp32 MXU matmuls + exact reciprocal -> tight parity with the reference.
    out_exact = jax.block_until_ready(cross_attention_pallas(
        query_feats, key_feats, params,
        mxu_dtype=jnp.float32, approx_reciprocal=False))
    assert jnp.allclose(out_exact, ref, atol=2e-3, rtol=2e-3), \
        float(jnp.max(jnp.abs(out_exact - ref)))

    print("KERNEL_OK")
</pallas_src>

<mosaic_0001>
module attributes {stable_mosaic.version = 11 : i64} {
  func.func @_cross_attention_kernel(%arg0: i32, %arg1: i32, %arg2: memref<1x32x128xf32, #tpu.memory_space<vmem>>, %arg3: memref<1x32x128xf32, #tpu.memory_space<vmem>>, %arg4: memref<32x32xf32, #tpu.memory_space<vmem>>, %arg5: memref<32x1xf32, #tpu.memory_space<vmem>>, %arg6: memref<64x32xf32, #tpu.memory_space<vmem>>, %arg7: memref<64x1xf32, #tpu.memory_space<vmem>>, %arg8: memref<1x32x128xf32, #tpu.memory_space<vmem>>) attributes {dimension_semantics = [#tpu.dimension_semantics<parallel>, #tpu.dimension_semantics<parallel>], iteration_bounds = array<i64: 2, 1>, scalar_prefetch = 0 : i64, scratch_operands = 0 : i64, tpu.core_type = #tpu.core_type<tc>, window_params = [{transform_indices = @transform_0, window_bounds = array<i64: 1, 32, 128>}, {transform_indices = @transform_1, window_bounds = array<i64: 1, 32, 128>}, {pipeline_mode = #tpu.pipeline_mode<synchronous>, transform_indices = @transform_2, window_bounds = array<i64: 32, 32>}, {pipeline_mode = #tpu.pipeline_mode<synchronous>, transform_indices = @transform_3, window_bounds = array<i64: 32, 1>}, {pipeline_mode = #tpu.pipeline_mode<synchronous>, transform_indices = @transform_4, window_bounds = array<i64: 64, 32>}, {pipeline_mode = #tpu.pipeline_mode<synchronous>, transform_indices = @transform_5, window_bounds = array<i64: 64, 1>}, {transform_indices = @transform_6, window_bounds = array<i64: 1, 32, 128>}]} {
    %c0 = arith.constant 0 : index
    %c0_0 = arith.constant 0 : index
    %0 = vector.load %arg4[%c0, %c0_0] : memref<32x32xf32, #tpu.memory_space<vmem>>, vector<32x32xf32>
    %1 = arith.truncf %0 : vector<32x32xf32> to vector<32x32xbf16>
    %c0_1 = arith.constant 0 : index
    %c0_2 = arith.constant 0 : index
    %c0_3 = arith.constant 0 : index
    %2 = vector.load %arg2[%c0_1, %c0_2, %c0_3] : memref<1x32x128xf32, #tpu.memory_space<vmem>>, vector<1x32x128xf32>
    %3 = vector.shape_cast %2 : vector<1x32x128xf32> to vector<32x128xf32>
    %4 = arith.truncf %3 : vector<32x128xf32> to vector<32x128xbf16>
    %cst = arith.constant dense<0.000000e+00> : vector<32x128xf32>
    %5 = tpu.matmul %1, %4, %cst {dimension_numbers = #tpu.dot_dimension_numbers<[1], [0], [0], [1], [0, 0, 1, 1], [], []>} : vector<32x32xbf16>, vector<32x128xbf16>, vector<32x128xf32> -> vector<32x128xf32>
    %c0_4 = arith.constant 0 : index
    %c0_5 = arith.constant 0 : index
    %6 = vector.load %arg5[%c0_4, %c0_5] : memref<32x1xf32, #tpu.memory_space<vmem>>, vector<32x1xf32>
    %7 = vector.broadcast %6 : vector<32x1xf32> to vector<32x128xf32>
    %8 = arith.addf %5, %7 : vector<32x128xf32>
    %cst_6 = arith.constant 0.000000e+00 : f32
    %9 = vector.broadcast %cst_6 : f32 to vector<32x128xf32>
    %10 = arith.maximumf %8, %9 : vector<32x128xf32>
    %11 = arith.truncf %10 : vector<32x128xf32> to vector<32x128xbf16>
    %c0_7 = arith.constant 0 : index
    %c0_8 = arith.constant 0 : index
    %12 = vector.load %arg6[%c0_7, %c0_8] : memref<64x32xf32, #tpu.memory_space<vmem>>, vector<64x32xf32>
    %13 = arith.truncf %12 : vector<64x32xf32> to vector<64x32xbf16>
    %c0_9 = arith.constant 0 : index
    %c0_10 = arith.constant 0 : index
    %14 = vector.load %arg7[%c0_9, %c0_10] : memref<64x1xf32, #tpu.memory_space<vmem>>, vector<64x1xf32>
    %cst_11 = arith.constant -1.000000e+30 : f32
    %15 = vector.broadcast %cst_11 : f32 to vector<1x128xf32>
    %cst_12 = arith.constant 0.000000e+00 : f32
    %16 = vector.broadcast %cst_12 : f32 to vector<1x128xf32>
    %cst_13 = arith.constant 0.000000e+00 : f32
    %17 = vector.broadcast %cst_13 : f32 to vector<32x128xf32>
    %cst_14 = arith.constant -1.000000e+30 : f32
    %c0_i32 = arith.constant 0 : i32
    %c128_i32 = arith.constant 128 : i32
    %18 = arith.muli %c0_i32, %c128_i32 : i32
    %19 = tpu.assume_multiple %18, 128 : i32
    %c0_15 = arith.constant 0 : index
    %c0_16 = arith.constant 0 : index
    %20 = arith.index_cast %19 : i32 to index
    %21 = vector.load %arg3[%c0_15, %c0_16, %20] : memref<1x32x128xf32, #tpu.memory_space<vmem>>, vector<1x32x128xf32>
    %22 = vector.shape_cast %21 : vector<1x32x128xf32> to vector<32x128xf32>
    %23 = arith.truncf %22 : vector<32x128xf32> to vector<32x128xbf16>
    %cst_17 = arith.constant dense<0.000000e+00> : vector<64x128xf32>
    %24 = tpu.matmul %13, %23, %cst_17 {dimension_numbers = #tpu.dot_dimension_numbers<[1], [0], [0], [1], [0, 0, 1, 1], [], []>} : vector<64x32xbf16>, vector<32x128xbf16>, vector<64x128xf32> -> vector<64x128xf32>
    %25 = vector.broadcast %14 : vector<64x1xf32> to vector<64x128xf32>
    %26 = arith.addf %24, %25 : vector<64x128xf32>
    %cst_18 = arith.constant 0.000000e+00 : f32
    %27 = vector.broadcast %cst_18 : f32 to vector<64x128xf32>
    %28 = arith.maximumf %26, %27 : vector<64x128xf32>
    %29 = vector.extract_strided_slice %28 {offsets = [0, 0], sizes = [32, 128], strides = [1, 1]} : vector<64x128xf32> to vector<32x128xf32>
    %30 = vector.extract_strided_slice %28 {offsets = [32, 0], sizes = [32, 128], strides = [1, 1]} : vector<64x128xf32> to vector<32x128xf32>
    %31 = arith.truncf %29 : vector<32x128xf32> to vector<32x128xbf16>
    %cst_19 = arith.constant dense<0.000000e+00> : vector<128x128xf32>
    %32 = tpu.matmul %31, %11, %cst_19 {dimension_numbers = #tpu.dot_dimension_numbers<[0], [0], [1], [1], [0, 1, 1, 1], [], []>} : vector<32x128xbf16>, vector<32x128xbf16>, vector<128x128xf32> -> vector<128x128xf32>
    %33 = tpu.iota {dimensions = array<i32: 0>} : vector<128x1xi32>
    %34 = vector.broadcast %19 : i32 to vector<128x1xi32>
    %35 = arith.addi %34, %33 : vector<128x1xi32>
    %c64_i32 = arith.constant 64 : i32
    %36 = vector.broadcast %c64_i32 : i32 to vector<128x1xi32>
    %37 = arith.cmpi slt, %35, %36 : vector<128x1xi32>
    %38 = vector.shape_cast %37 : vector<128x1xi1> to vector<128x1xi1>
    %39 = vector.broadcast %38 : vector<128x1xi1> to vector<128x128xi1>
    %40 = vector.broadcast %cst_14 : f32 to vector<128x128xf32>
    %41 = arith.select %39, %32, %40 : vector<128x128xi1>, vector<128x128xf32>
    %cst_20 = arith.constant dense<0xFF800000> : vector<128xf32>
    %42 = vector.multi_reduction <maximumf>, %41, %cst_20 [0] : vector<128x128xf32> to vector<128xf32>
    %43 = vector.shape_cast %42 : vector<128xf32> to vector<1x128xf32>
    %44 = arith.maximumf %15, %43 : vector<1x128xf32>
    %45 = arith.subf %15, %44 : vector<1x128xf32>
    %46 = math.exp %45 : vector<1x128xf32>
    %47 = vector.broadcast %44 : vector<1x128xf32> to vector<128x128xf32>
    %48 = arith.subf %41, %47 : vector<128x128xf32>
    %49 = math.exp %48 : vector<128x128xf32>
    %50 = arith.mulf %46, %16 : vector<1x128xf32>
    %cst_21 = arith.constant dense<0.000000e+00> : vector<128xf32>
    %51 = vector.multi_reduction <add>, %49, %cst_21 [0] : vector<128x128xf32> to vector<128xf32>
    %52 = vector.shape_cast %51 : vector<128xf32> to vector<1x128xf32>
    %53 = arith.addf %50, %52 : vector<1x128xf32>
    %54 = vector.broadcast %46 : vector<1x128xf32> to vector<32x128xf32>
    %55 = arith.mulf %54, %17 : vector<32x128xf32>
    %56 = arith.truncf %30 : vector<32x128xf32> to vector<32x128xbf16>
    %57 = arith.truncf %49 : vector<128x128xf32> to vector<128x128xbf16>
    %cst_22 = arith.constant dense<0.000000e+00> : vector<32x128xf32>
    %58 = tpu.matmul %56, %57, %cst_22 {dimension_numbers = #tpu.dot_dimension_numbers<[1], [0], [0], [1], [0, 0, 1, 1], [], []>} : vector<32x128xbf16>, vector<128x128xbf16>, vector<32x128xf32> -> vector<32x128xf32>
    %59 = arith.addf %55, %58 : vector<32x128xf32>
    %c1_i32 = arith.constant 1 : i32
    %60 = tpu.reciprocal %53 {approx = true} : vector<1x128xf32> -> vector<1x128xf32>
    %61 = vector.broadcast %60 : vector<1x128xf32> to vector<32x128xf32>
    %62 = arith.mulf %59, %61 : vector<32x128xf32>
    %c0_23 = arith.constant 0 : index
    %c0_24 = arith.constant 0 : index
    %c0_25 = arith.constant 0 : index
    %63 = vector.load %arg8[%c0_23, %c0_24, %c0_25] : memref<1x32x128xf32, #tpu.memory_space<vmem>>, vector<1x32x128xf32>
    %64 = vector.shape_cast %63 : vector<1x32x128xf32> to vector<32x128xf32>
    %65 = vector.shape_cast %62 : vector<32x128xf32> to vector<1x32x128xf32>
    tpu.vector_store %arg8[%c0_23, %c0_24, %c0_25], %65 {strides = array<i32>} : memref<1x32x128xf32, #tpu.memory_space<vmem>>, vector<1x32x128xf32>,
    return
  }
  func.func @transform_0(%arg0: i32, %arg1: i32) -> (i32, i32, i32) {
    %c0_i32 = arith.constant 0 : i32
    %c0_i32_0 = arith.constant 0 : i32
    return %arg0, %c0_i32, %arg1 : i32, i32, i32
  }
  func.func @transform_1(%arg0: i32, %arg1: i32) -> (i32, i32, i32) {
    %c0_i32 = arith.constant 0 : i32
    %c0_i32_0 = arith.constant 0 : i32
    %c0_i32_1 = arith.constant 0 : i32
    return %arg0, %c0_i32, %c0_i32_0 : i32, i32, i32
  }
  func.func @transform_2(%arg0: i32, %arg1: i32) -> (i32, i32) {
    %c0_i32 = arith.constant 0 : i32
    %c0_i32_0 = arith.constant 0 : i32
    %c0_i32_1 = arith.constant 0 : i32
    return %c0_i32, %c0_i32_0 : i32, i32
  }
  func.func @transform_3(%arg0: i32, %arg1: i32) -> (i32, i32) {
    %c0_i32 = arith.constant 0 : i32
    %c0_i32_0 = arith.constant 0 : i32
    %c0_i32_1 = arith.constant 0 : i32
    return %c0_i32, %c0_i32_0 : i32, i32
  }
  func.func @transform_4(%arg0: i32, %arg1: i32) -> (i32, i32) {
    %c0_i32 = arith.constant 0 : i32
    %c0_i32_0 = arith.constant 0 : i32
    %c0_i32_1 = arith.constant 0 : i32
    return %c0_i32, %c0_i32_0 : i32, i32
  }
  func.func @transform_5(%arg0: i32, %arg1: i32) -> (i32, i32) {
    %c0_i32 = arith.constant 0 : i32
    %c0_i32_0 = arith.constant 0 : i32
    %c0_i32_1 = arith.constant 0 : i32
    return %c0_i32, %c0_i32_0 : i32, i32
  }
  func.func @transform_6(%arg0: i32, %arg1: i32) -> (i32, i32, i32) {
    %c0_i32 = arith.constant 0 : i32
    %c0_i32_0 = arith.constant 0 : i32
    return %arg0, %c0_i32, %arg1 : i32, i32, i32
  }
}

</mosaic_0001>

<bundles_post_ra>
// kernel: tpu_custom_call.1
= control target key start
LH: loop header
LB: loop body
LE: loop exit
PB: predicated region body
PF: predicated region fallthrough
CT: control target
= control target key end

     0   :  { %11 = vsyncpa [#allocation3], 0  ;;  %s1583_s0 = inlined_call_operand.vmem [shape: f32[2,32,128], index: 0, kind: input, shape index: {}]   ;;  %s1584_s1 = inlined_call_operand.vmem [shape: f32[2,32,128], index: 1, kind: input, shape index: {}]   ;;  %s1585_s2 = inlined_call_operand.vmem [shape: f32[32,32], index: 2, kind: input, shape index: {}]   ;;  %s1586_s3 = inlined_call_operand.vmem [shape: f32[32,1], index: 3, kind: input, shape index: {}]   ;;  %s1587_s4 = inlined_call_operand.vmem [shape: f32[64,32], index: 4, kind: input, shape index: {}]   ;;  %s1588_s5 = inlined_call_operand.vmem [shape: f32[64,1], index: 5, kind: input, shape index: {}]   ;;  %s1589_s6 = inlined_call_operand.hbm [shape: f32[2,32,128], index: 6, kind: output, shape index: {}]  }
   0x1   :  { %13 = vsyncpa [#allocation3 + $0x1], 0  ;;  %s1376_s21 = smov 0   ;;  %s1378_s22 = smov 0  }
   0x2   :  { %s1380_s23 = smov 0   ;;  %s1382_s24 = smov 0  }
   0x3   :  { %s1384_s25 = smov 0   ;;  %s1386_s26 = smov 0  }
   0x4 LB: > { %s1055_s27 = sadd.s32 4294967295, %s1335_s26   ;;  %s1056_s28 = sadd.s32 4294967294, %s1335_s26   ;;  %s1335_s26 = sphi %s1386_s26, %s19_s26   ;;  %s1331_s25 = sphi %s1384_s25, %s1596_s25   ;;  %s1327_s24 = sphi %s1382_s24, %s1595_s24   ;;  %s1323_s23 = sphi %s1380_s23, %s1594_s23   ;;  %s1319_s22 = sphi %s1378_s22, %s1593_s22   ;;  %s1315_s21 = sphi %s1376_s21, %s1592_s21  }
   0x5   : > { %s31_s29 = sadd.s32 1, %s1331_s25  ;;  %s178_s30 = sadd.s32 1, %s1323_s23 }
   0x6   : > { %p33_p0 = scmp.ge.s32.totalorder %s31_s29, 2  ;;  %p188_p1 = scmp.ne.s32.totalorder %s1323_s23, %s1319_s22 }
   0x7   : > { %p189_p2 = scmp.eq.s32.totalorder %s1055_s27, 1  ;;  %p194_p3 = scmp.ne.s32.totalorder %s1319_s22, %s1315_s21 }
   0x8   : > { %s1598_s29 = smov (%p33_p0, %s31_s29), 0  ;;  %p195_p5 = scmp.eq.s32.totalorder %s1056_s28, 1 }
   0x9   : > { %p1416_p4 = por %p189_p2, %p188_p1  ;;  %s173_s8 = ssub.s32 %s1331_s25, %s1598_s29 }
   0xa   : > { %p1059_p6 = scmp.ge.s32.totalorder %s1335_s26, 1  ;;  %p176_p7 = scmp.eq.s32.totalorder %s173_s8, 0 }
   0xb   : > { %p1423_p8 = por %p195_p5, %p194_p3  ;;  %p244_p9 = scmp.lt.s32.totalorder %s1335_s26, 3 }
   0xc   : > { %s1429_s10 = scalar_select %p176_p7, %s1323_s23, %s178_s30  }
   0xd   : > { %p245_p10 = pnand %p1059_p6, %p244_p9 }
   0xe   : > { %p282_p11 = scmp.lt.s32.totalorder (!%p245_p10), %s1327_s24, 1  ;;  %v296_v0 = vld [vmem:[%s1585_s2] sm:$0xff] (!%p245_p10)  ;;  %v297_v1 = vld [vmem:[%s1585_s2 + $0x8] sm:$0xff] (!%p245_p10)  ;;  %vm332_vm0 = vcmask (!%p245_p10), 261120   ;;  %v1337_v5 = vmov (!%p245_p10), 0   ;;  %v408_v7 = vld [vmem:[%s1588_s5 + $0x10] sm:$0xff] (!%p245_p10) }
   0xf   : > { %248 = sbr.rel (%p245_p10) target bundleno = 897 (0x381), region = 44  ;;  %v394_v2 = vld [vmem:[%s1587_s4] sm:$0xff] (!%p245_p10)  ;;  %v300_v3 = vpack.c.bf16 (!%p245_p10), %v297_v1, %v296_v0  ;;  %v395_v4 = vld [vmem:[%s1587_s4 + $0x8] sm:$0xff] (!%p245_p10)  ;;  %1236 = vset.pattern.permute.xlu1 (!%p245_p10), %v1337_v5  ;;  %1235 = vset.pattern.permute.xlu0 (!%p245_p10), %v1337_v5  ;;  %v409_v8 = vld [vmem:[%s1588_s5 + $0x18] sm:$0xff] (!%p245_p10)  ;;  %s1086_s15 = sshll.u32 (!%p245_p10), %s1327_s24, 9 }
  0x10   : > { %v402_v6 = vpack.c.bf16 (!%p245_p10), %v395_v4, %v394_v2  ;;  %432 = vperm.xlu1 (!%p245_p10), %1236, %v408_v7   ;;  %v406_v9 = vld [vmem:[%s1588_s5] sm:$0xff] (!%p245_p10)  ;;  %v407_v22 = vld [vmem:[%s1588_s5 + $0x8] sm:$0xff] (!%p245_p10)  ;;  %v298_v23 = vld [vmem:[%s1585_s2 + $0x10] sm:$0xff] (!%p245_p10)  ;;  %s1535_s18 = scalar_lea.hbm (!%p245_p10), %s1589_s6, %s1086_s15 }
  0x11   : > { %1121 = vmatprep.mubr.msk.bf16.mxu0 (!%p245_p10), %vm332_vm0, %v300_v3  ;;  %422 = vperm.xlu0 (!%p245_p10), %1235, %v406_v9   ;;  %v299_v24 = vld [vmem:[%s1585_s2 + $0x18] sm:$0xff] (!%p245_p10)  ;;  %v309_v25 = vld [vmem:[%s1586_s3 + $0x8] sm:$0xff] (!%p245_p10)  ;;  %v396_v26 = vld [vmem:[%s1587_s4 + $0x10] sm:$0xff] (!%p245_p10) }
  0x12   : > { %1129 = vmatprep.mubr.msk.bf16.mxu1 (!%p245_p10), %vm332_vm0, %v402_v6  ;;  %v397_v27 = vld [vmem:[%s1587_s4 + $0x18] sm:$0xff] (!%p245_p10)  ;;  %v398_v28 = vld [vmem:[%s1587_s4 + $0x20] sm:$0xff] (!%p245_p10)  ;;  %v399_v29 = vld [vmem:[%s1587_s4 + $0x28] sm:$0xff] (!%p245_p10)  ;;  %v301_v30 = vpack.c.bf16 (!%p245_p10), %v299_v24, %v298_v23 }
  0x13   : > { %v308_v31 = vld [vmem:[%s1586_s3] sm:$0xff] (!%p245_p10)  ;;  %v403_v32 = vpack.c.bf16 (!%p245_p10), %v397_v27, %v396_v26  ;;  %v311_v33 = vld [vmem:[%s1586_s3 + $0x18] sm:$0xff] (!%p245_p10)  ;;  %v404_v34 = vpack.c.bf16 (!%p245_p10), %v399_v29, %v398_v28  ;;  %v310_v35 = vld [vmem:[%s1586_s3 + $0x10] sm:$0xff] (!%p245_p10) }
  0x14   : > { %437 = vperm.xlu1 (!%p245_p10), %1236, %v409_v8   ;;  %v410_v36 = vld [vmem:[%s1588_s5 + $0x20] sm:$0xff] (!%p245_p10)  ;;  %v400_v37 = vld [vmem:[%s1587_s4 + $0x30] sm:$0xff] (!%p245_p10)  ;;  %v401_v38 = vld [vmem:[%s1587_s4 + $0x38] sm:$0xff] (!%p245_p10) }
  0x15   : > { %427 = vperm.xlu0 (!%p245_p10), %1235, %v407_v22   ;;  %v405_v39 = vpack.c.bf16 (!%p245_p10), %v401_v38, %v400_v37  ;;  %v411_v40 = vld [vmem:[%s1588_s5 + $0x28] sm:$0xff] (!%p245_p10)  ;;  %v412_v41 = vld [vmem:[%s1588_s5 + $0x30] sm:$0xff] (!%p245_p10)  ;;  %v413_v42 = vld [vmem:[%s1588_s5 + $0x38] sm:$0xff] (!%p245_p10) }
  0x16   : > { %s283_s19 = scalar_select %p282_p11, %s1327_s24, 1 }
  0x18   : > { %s1084_s20 = sshll.u32 %s283_s19, 5  ;;  %319 = vperm.xlu1 %1236, %v309_v25  }
  0x19   : > { %s289_s11 = scalar_lea.vmem %s1583_s0, %s1084_s20  ;;  %s294_s14 = scalar_lea.vmem %s1584_s1, %s1084_s20  ;;  %314 = vperm.xlu0 %1235, %v308_v31  }
  0x1a   : > { %v302_v10 = vld [vmem:[%s289_s11] sm:$0xff]  ;;  %v303_v11 = vld [vmem:[%s289_s11 + $0x8] sm:$0xff]  ;;  %v304_v15 = vld [vmem:[%s289_s11 + $0x10] sm:$0xff]  ;;  %s1338_s20 = smov [#allocation2]  }
  0x1b   : > { %v414_v12 = vld [vmem:[%s294_s14] sm:$0xff]  ;;  %v306_v13 = vpack.c.bf16 %v303_v11, %v302_v10  ;;  %v415_v14 = vld [vmem:[%s294_s14 + $0x8] sm:$0xff]  ;;  %v305_v16 = vld [vmem:[%s289_s11 + $0x18] sm:$0xff]  ;;  %s279_s11 = sand.u32 1, %s1319_s22   ;;  %s1261_s27 = sshll.u32 %s1338_s20, 4  ;;  %s1262_s27 = int_to_ptr.vmem [resolvable:$false] %s1261_s27 }
  0x1c   : > { %v418_v17 = vpack.c.bf16 %v415_v14, %v414_v12  ;;  %v307_v18 = vpack.c.bf16 %v305_v16, %v304_v15  ;;  %v416_v19 = vld [vmem:[%s294_s14 + $0x10] sm:$0xff]  ;;  %v417_v20 = vld [vmem:[%s294_s14 + $0x18] sm:$0xff]  ;;  %329 = vperm.xlu1 %1236, %v311_v33   ;;  %s1060_s12 = sshll.u32 %s279_s11, 5  ;;  %s1537_s19 = scalar_lea.sflag [#allocation3], %s279_s11 }
  0x1d   : > { %1117 = vmatprep.subr.bf16.mxu0 %v306_v13  ;;  %v419_v21 = vpack.c.bf16 %v417_v20, %v416_v19  ;;  %324 = vperm.xlu0 %1235, %v310_v35   ;;  %s281_s13 = scalar_lea.vmem [#allocation2], %s1060_s12  ;;  %s1263_s28 = scalar_lea.vmem %s1262_s27, 1024 }
  0x1e   : > { %1125 = vmatprep.subr.bf16.mxu1 %v418_v17  ;;  %1118 = vmatpush3.bf16.msra.mxu0 %v306_v13  ;;  %s965_s14 = sshll.u32 %s281_s13, 4  ;;  %s1530_s14 = int_to_ptr.vmem [resolvable:$true] %s965_s14 }
  0x1f   : > { %1126 = vmatpush3.bf16.msra.mxu1 %v418_v17  ;;  %1119 = vmatprep.subr.bf16.mxu0 %v307_v18  ;;  %s1257_s24 = scalar_lea.vmem %s1530_s14, 512  ;;  %p1264_p1 = scmp.lt.s32.totalorder %s1530_s14, %s1262_s27 }
  0x20   : > { %1127 = vmatprep.subr.bf16.mxu1 %v419_v21  ;;  %442 = vperm.xlu1 %1236, %v410_v36   ;;  %p1258_p12 = scmp.ne.s32.totalorder %s1530_s14, %s1257_s24  ;;  %p1265_p2 = scmp.lt.s32.totalorder %s1263_s28, %s1257_s24 }
  0x22   : > { %1120 = vmatpush3.bf16.msra.mxu0 %v307_v18  ;;  %p1259_p13 = pnand %p1258_p12, %p1416_p4  ;;  %p1266_p3 = por %p1265_p2, %p1264_p1 }
  0x23   : > { %1128 = vmatpush3.bf16.msra.mxu1 %v419_v21 }
  0x24   : > { %447 = vperm.xlu1 %1236, %v411_v40   ;;  %p1260_p0 = pneg %p1259_p13 }
  0x25   : > { %1122 = vmatmul.mubr.msk.bf16.vlgmr.msra.gmra.mrb[0].mxu0 %vm332_vm0, %v301_v30 }
  0x26   : > { %1130 = vmatmul.mubr.msk.bf16.vlgmr.msra.gmra.mrb[0].mxu1 %vm332_vm0, %v403_v32  ;;  %p1267_p5 = pnand %p1266_p3, %p1260_p0 }
  0x27   : > { %1133 = vmatprep.mubr.msk.bf16.mxu1 %vm332_vm0, %v404_v34 }
  0x28   : > { %452 = vperm.xlu1 %1236, %v412_v41  }
  0x2c   : > { %457 = vperm.xlu1 %1236, %v413_v42  }
  0x2e   : > { %1134 = vmatmul.mubr.msk.bf16.gmra.mrb[4].mxu1 %vm332_vm0, %v405_v39 }
  0x8f   : > { %v433_v43 = vpop.permute.xlu1 %432 }
  0x90   : > { %v423_v45 = vpop.permute.xlu0 %422 }
  0x93   : > { %v438_v44 = vpop.permute.xlu1 %437 }
  0x94   : > { %v428_v47 = vpop.permute.xlu0 %427 }
  0x97   : > { %v320_v46 = vpop.permute.xlu1 %319 }
  0x98   : > { %v315_v49 = vpop.permute.xlu0 %314 }
  0x9b   : > { %v330_v48 = vpop.permute.xlu1 %329 }
  0x9c   : > { %v325_v51 = vpop.permute.xlu0 %324 }
  0x9f   : > { %v443_v50 = vpop.permute.xlu1 %442 }
  0xa3   : > { %v448_v52 = vpop.permute.xlu1 %447 }
  0xa7   : > { %v453_v4 = vpop.permute.xlu1 %452 }
  0xab   : > { %v458_v21 = vpop.permute.xlu1 %457 }
  0xf8   : > { %v1123_v53 = vpop.f32.mrb[0].mxu0 }
  0xf9   : > { %v382_v54 = vadd.f32 %v1123_v53, %v325_v51  ;;  %v1131_v55 = vpop.f32.mrb[0].mxu1  ;;  %v373_v56 = vpop.f32.mrb[1].mxu0 }
  0xfa   : > { %v515_v57 = vadd.f32 %v1131_v55, %v433_v43  ;;  %v374_v58 = vadd.f32 %v373_v56, %v315_v49  ;;  %v506_v59 = vpop.f32.mrb[1].mxu1  ;;  %v1124_v60 = vpop.f32.mrb[2].mxu0 }
  0xfb   : > { %v507_v61 = vadd.f32 %v506_v59, %v423_v45  ;;  %v385_v62 = vadd.f32 %v1124_v60, %v330_v48  ;;  %v1132_v63 = vpop.f32.mrb[2].mxu1  ;;  %v376_v0 = vpop.f32.mrb[3].mxu0  ;;  %v390_v5 = vmax.f32 %v382_v54, 0.0 }
  0xfc   : > { %v518_v1 = vadd.f32 %v1132_v63, %v438_v44  ;;  %v377_v2 = vadd.f32 %v376_v0, %v320_v46  ;;  %v509_v3 = vpop.f32.mrb[3].mxu1  ;;  %v539_v8 = vmax.f32 %v515_v57, 0.0  ;;  %v388_v9 = vmax.f32 %v374_v58, 0.0 }
  0xfd   : > { %v391_v6 = vmax.f32 %v385_v62, 0.0  ;;  %v510_v7 = vadd.f32 %v509_v3, %v428_v47  ;;  %v537_v12 = vmax.f32 %v507_v61, 0.0 }
  0xfe   : > { %v540_v10 = vmax.f32 %v518_v1, 0.0  ;;  %v389_v11 = vmax.f32 %v377_v2, 0.0 }
  0xff   : > { %v393_v13 = vpack.c.bf16 %v391_v6, %v390_v5  ;;  %v538_v14 = vmax.f32 %v510_v7, 0.0 }
 0x100   : > { %v546_v15 = vpack.c.bf16 %v540_v10, %v539_v8  ;;  %v392_v16 = vpack.c.bf16 %v389_v11, %v388_v9 }
 0x101   : > { %v545_v17 = vpack.c.bf16 %v538_v14, %v537_v12  ;;  %v1135_v18 = vpop.f32.mrb[4].mxu1 }
 0x102   : > { %v531_v19 = vadd.f32 %v1135_v18, %v453_v4  ;;  %v522_v20 = vpop.f32.mrb[5].mxu1  ;;  %1137 = vmatprep.subr.bf16.mxu0 %v392_v16 }
 0x103   : > { %v523_v22 = vadd.f32 %v522_v20, %v443_v50  ;;  %v1136_v23 = vpop.f32.mrb[6].mxu1  ;;  %547 = vxpose.xlu0.c.b16.start [1/2] (short) %v545_v17, 128  ;;  %1138 = vmatpush3.bf16.msra.mxu0 %v392_v16 }
 0x104   : > { %v534_v24 = vadd.f32 %v1136_v23, %v458_v21  ;;  %v525_v25 = vpop.f32.mrb[7].mxu1  ;;  %1139 = vmatprep.subr.bf16.mxu0 %v393_v13  ;;  %v543_v27 = vmax.f32 %v531_v19, 0.0 }
 0x105   : > { %v526_v26 = vadd.f32 %v525_v25, %v448_v52  ;;  %v541_v29 = vmax.f32 %v523_v22, 0.0 }
 0x106   : > { %v544_v28 = vmax.f32 %v534_v24, 0.0 }
 0x107   : > { %v542_v30 = vmax.f32 %v526_v26, 0.0  ;;  %548 = vxpose.xlu0.c.b16.end [2/2] (short) %v546_v15, 128  ;;  %1140 = vmatpush3.bf16.msra.mxu0 %v393_v13 }
 0x108   : > { %v1517_v31 = vpack.c.bf16 %v544_v28, %v543_v27 }
 0x109   : > { %v878_v32 = vpack.c.bf16 %v542_v30, %v541_v29 }
 0x10b   : > { %1173 = vmatprep.mubr.bf16.mxu1 %v878_v32 }
 0x169   : > { %v555_v33 = vpop.trf.xlu0 }
 0x16a   : > { %1141 = vmatprep.mubr.msk.bf16.mxu0 %vm332_vm0, %v555_v33 }
 0x16d   : > { %v556_v34 = vpop.trf.xlu0 }
 0x16e   : > { %1142 = vmatmul.mubr.msk.bf16.vlgmr.msra.gmra.mrb[4].mxu0 %vm332_vm0, %v556_v34 }
 0x171   : > { %v557_v35 = vpop.trf.xlu0 }
 0x172   : > { %1145 = vmatprep.mubr.msk.bf16.mxu0 %vm332_vm0, %v557_v35 }
 0x175   : > { %v558_v36 = vpop.trf.xlu0 }
 0x176   : > { %1146 = vmatmul.mubr.msk.bf16.gmra.mrb[8].mxu0 %vm332_vm0, %v558_v36 }
 0x179   : > { %v559_v37 = vpop.trf.xlu0 }
 0x17a   : > { %1149 = vmatprep.mubr.msk.bf16.mxu0 %vm332_vm0, %v559_v37 }
 0x17d   : > { %v560_v38 = vpop.trf.xlu0 }
 0x17e   : > { %1150 = vmatmul.mubr.msk.bf16.gmra.mrb[12].mxu0 %vm332_vm0, %v560_v38 }
 0x181   : > { %v561_v39 = vpop.trf.xlu0 }
 0x182   : > { %1153 = vmatprep.mubr.msk.bf16.mxu0 %vm332_vm0, %v561_v39 }
 0x185   : > { %v562_v40 = vpop.trf.xlu0 }
 0x186   : > { %1154 = vmatmul.mubr.msk.bf16.gmra.mrb[16].mxu0 %vm332_vm0, %v562_v40 }
 0x241   : > { %v1143_v41 = vpop.f32.mrb[4].mxu0 }
 0x242   : > { %v621_v42 = vpop.f32.mrb[5].mxu0 }
 0x243   : > { %v1144_v43 = vpop.f32.mrb[6].mxu0 }
 0x244   : > { %v624_v44 = vpop.f32.mrb[7].mxu0 }
 0x249   : > { %v1147_v45 = vpop.f32.mrb[8].mxu0 }
 0x24a   : > { %v784_v46 = vmax.f32 %v1143_v41, %v1147_v45  ;;  %v637_v47 = vpop.f32.mrb[9].mxu0 }
 0x24b   : > { %v782_v48 = vmax.f32 %v621_v42, %v637_v47  ;;  %v1148_v49 = vpop.f32.mrb[10].mxu0 }
 0x24c   : > { %v788_v50 = vmax.f32 %v784_v46, -1e+30  ;;  %v785_v51 = vmax.f32 %v1144_v43, %v1148_v49  ;;  %v640_v52 = vpop.f32.mrb[11].mxu0 }
 0x24d   : > { %v786_v53 = vmax.f32 %v782_v48, -1e+30  ;;  %v783_v54 = vmax.f32 %v624_v44, %v640_v52 }
 0x24e   : > { %v789_v55 = vmax.f32 %v785_v51, -1e+30  ;;  %v792_v57 = vmax.f32 %v788_v50, -1e+30 }
 0x24f   : > { %v787_v56 = vmax.f32 %v783_v54, -1e+30  ;;  %v790_v59 = vmax.f32 %v786_v53, -1e+30 }
 0x250   : > { %v793_v58 = vmax.f32 %v789_v55, -1e+30 }
 0x251   : > { %v791_v60 = vmax.f32 %v787_v56, -1e+30 }
 0x252   : > { %v795_v61 = vmax.f32 %v792_v57, %v793_v58 }
 0x253   : > { %v794_v62 = vmax.f32 %v790_v59, %v791_v60 }
 0x255   : > { %v796_v63 = vmax.f32 %v794_v62, %v795_v61 }
 0x257   : > { %v797_v0 = vrot.slane %v796_v63, 4 }
 0x259   : > { %v798_v1 = vmax.f32 %v796_v63, %v797_v0  ;;  %v1151_v63 = vpop.f32.mrb[12].mxu0 }
 0x25a   : > { %v653_v0 = vpop.f32.mrb[13].mxu0 }
 0x25b   : > { %v799_v2 = vrot.slane %v798_v1, 2 }
 0x25d   : > { %v800_v3 = vmax.f32 %v798_v1, %v799_v2  ;;  %v1152_v1 = vpop.f32.mrb[14].mxu0 }
 0x25e   : > { %v656_v2 = vpop.f32.mrb[15].mxu0 }
 0x25f   : > { %v801_v4 = vrot.slane %v800_v3, 1 }
 0x261   : > { %v802_v5 = vmax.f32 %v800_v3, %v801_v4  ;;  %v1155_v3 = vpop.f32.mrb[16].mxu0 }
 0x262   : > { %v669_v4 = vpop.f32.mrb[17].mxu0 }
 0x263   : > { %v803_v6 = vmax.f32 %v802_v5, -1e+30  ;;  %v1156_v5 = vpop.f32.mrb[18].mxu0 }
 0x265   : > { %v807_v7 = vsub.f32 %v621_v42, %v803_v6  ;;  %v808_v8 = vsub.f32 %v624_v44, %v803_v6  ;;  %v809_v9 = vsub.f32 %v1143_v41, %v803_v6  ;;  %v810_v10 = vsub.f32 %v1144_v43, %v803_v6 }
 0x266   : > { %v811_v11 = vsub.f32 %v637_v47, %v803_v6  ;;  %v812_v12 = vsub.f32 %v640_v52, %v803_v6  ;;  %v813_v13 = vsub.f32 %v1147_v45, %v803_v6  ;;  %v814_v16 = vsub.f32 %v1148_v49, %v803_v6 }
 0x267   : > { %v823_v14 = vmul.f32 1.442695, %v807_v7  ;;  %v825_v15 = vmul.f32 1.442695, %v808_v8  ;;  %v827_v17 = vmul.f32 1.442695, %v809_v9 }
 0x268   : > { %v829_v18 = vmul.f32 1.442695, %v810_v10  ;;  %v831_v19 = vmul.f32 1.442695, %v811_v11  ;;  %v833_v20 = vmul.f32 1.442695, %v812_v12 }
 0x269   : > { %1237 = vpow2.f32 %v823_v14  ;;  %v835_v21 = vmul.f32 1.442695, %v813_v13  ;;  %v837_v22 = vmul.f32 1.442695, %v814_v16  ;;  %v804_v23 = vsub.f32 -1e+30, %v803_v6 }
 0x26a   : > { %1239 = vpow2.f32 %v825_v15  ;;  %v672_v6 = vpop.f32.mrb[19].mxu0 }
 0x26b   : > { %1241 = vpow2.f32 %v827_v17  ;;  %v805_v24 = vmul.f32 1.442695, %v804_v23 }
 0x26c   : > { %1243 = vpow2.f32 %v829_v18 }
 0x26d   : > { %1245 = vpow2.f32 %v831_v19 }
 0x26e   : > { %1247 = vpow2.f32 %v833_v20 }
 0x26f   : > { %1249 = vpow2.f32 %v835_v21 }
 0x270   : > { %1251 = vpow2.f32 %v837_v22 }
 0x271   : > { %1253 = vpow2.f32 %v805_v24 }
 0x273   : > { %v1238_v25 = vpop.eup %1237 }
 0x274   : > { %v1240_v26 = vpop.eup %1239 }
 0x275   : > { %v1242_v27 = vpop.eup %1241  ;;  %v856_v28 = vadd.f32 %v1240_v26, %v1238_v25  ;;  %v880_v29 = vpack.c.bf16 %v1240_v26, %v1238_v25 }
 0x276   : > { %v1244_v30 = vpop.eup %1243 }
 0x277   : > { %v1246_v32 = vpop.eup %1245  ;;  %v857_v33 = vadd.f32 %v1242_v27, %v856_v28  ;;  %1157 = vmatprep.subr.bf16.mxu1 %v880_v29  ;;  %v881_v34 = vpack.c.bf16 %v1244_v30, %v1242_v27 }
 0x278   : > { %v1248_v35 = vpop.eup %1247  ;;  %1158 = vmatpush3.bf16.msra.mxu1 %v880_v29 }
 0x279   : > { %v1250_v36 = vpop.eup %1249  ;;  %v858_v37 = vadd.f32 %v1244_v30, %v857_v33  ;;  %1159 = vmatprep.subr.bf16.mxu1 %v881_v34  ;;  %v882_v38 = vpack.c.bf16 %v1248_v35, %v1246_v32 }
 0x27a   : > { %v1252_v39 = vpop.eup %1251 }
 0x27b   : > { %v859_v40 = vadd.f32 %v1246_v32, %v858_v37  ;;  %v883_v41 = vpack.c.bf16 %v1252_v39, %v1250_v36  ;;  %v1254_v44 = vpop.eup %1253 }
 0x27c   : > { %1160 = vmatpush3.bf16.msra.mxu1 %v881_v34  ;;  %v884_v47 = vpack.c.bf16 %v1254_v44, %v1254_v44  ;;  %v855_v60 = vmul.f32 0.0, %v1254_v44 }
 0x27d   : > { %v860_v42 = vadd.f32 %v1248_v35, %v859_v40  ;;  %1161 = vmatprep.subr.bf16.mxu1 %v882_v38 }
 0x27f   : > { %v861_v43 = vadd.f32 %v1250_v36, %v860_v42 }
 0x280   : > { %1162 = vmatpush3.bf16.msra.mxu1 %v882_v38 }
 0x281   : > { %v862_v45 = vadd.f32 %v1252_v39, %v861_v43  ;;  %1163 = vmatprep.subr.bf16.mxu1 %v883_v41 }
 0x283   : > { %v863_v46 = vadd.f32 %v1254_v44, %v862_v45 }
 0x284   : > { %1164 = vmatpush3.bf16.msra.mxu1 %v883_v41 }
 0x285   : > { %v864_v48 = vadd.f32 %v1254_v44, %v863_v46  ;;  %1165 = vmatprep.subr.bf16.mxu1 %v884_v47 }
 0x287   : > { %v865_v49 = vadd.f32 %v1254_v44, %v864_v48 }
 0x288   : > { %1166 = vmatpush3.bf16.msra.mxu1 %v884_v47 }
 0x289   : > { %v866_v50 = vadd.f32 %v1254_v44, %v865_v49  ;;  %1167 = vmatprep.subr.bf16.mxu1 %v884_v47 }
 0x28b   : > { %v867_v51 = vadd.f32 %v1254_v44, %v866_v50 }
 0x28c   : > { %1168 = vmatpush3.bf16.msra.mxu1 %v884_v47 }
 0x28d   : > { %1169 = vmatprep.subr.bf16.mxu1 %v884_v47  ;;  %v868_v52 = vadd.f32 %v1254_v44, %v867_v51 }
 0x28f   : > { %v869_v53 = vadd.f32 %v1254_v44, %v868_v52 }
 0x290   : > { %1170 = vmatpush3.bf16.msra.mxu1 %v884_v47 }
 0x291   : > { %1171 = vmatprep.subr.bf16.mxu1 %v884_v47  ;;  %v870_v54 = vadd.f32 %v1254_v44, %v869_v53 }
 0x293   : > { %v871_v55 = vrot.slane %v870_v54, 4 }
 0x294   : > { %1172 = vmatpush3.bf16.msra.mxu1 %v884_v47 }
 0x295   : > { %v872_v56 = vadd.f32 %v871_v55, %v870_v54 }
 0x297   : > { %1174 = vmatmul.mubr.bf16.vlgmr.msra.gmra.mrb[8].mxu1 %v1517_v31  ;;  %v873_v57 = vrot.slane %v872_v56, 2 }
 0x299   : > { %v874_v58 = vadd.f32 %v873_v57, %v872_v56 }
 0x29b   : > { %v875_v59 = vrot.slane %v874_v58, 1 }
 0x29d   : > { %v876_v61 = vadd.f32 %v875_v59, %v874_v58 }
 0x29f   : > { %v877_v62 = vadd.f32 %v876_v61, %v855_v60 }
 0x2a1   : > { %1255 = vrcp.f32 %v877_v62 }
 0x2ab   : > { %v1256_v9 = vpop.eup %1255 }
 0x36a   : > { %v1175_v31 = vpop.f32.mrb[8].mxu1 }
 0x36b   : > { %v939_v7 = vadd.f32 %v1175_v31, %v855_v60  ;;  %v922_v8 = vpop.f32.mrb[9].mxu1 }
 0x36c   : > { %v937_v10 = vadd.f32 %v922_v8, %v855_v60  ;;  %v1176_v11 = vpop.f32.mrb[10].mxu1 }
 0x36d   : > { %v944_v12 = vmul.f32 %v1256_v9, %v939_v7  ;;  %v940_v13 = vadd.f32 %v1176_v11, %v855_v60  ;;  %v925_v14 = vpop.f32.mrb[11].mxu1 }
 0x36e   : > { %v942_v15 = vmul.f32 %v1256_v9, %v937_v10  ;;  %v938_v16 = vadd.f32 %v925_v14, %v855_v60 }
 0x36f   : > { %948 = vst [vmem:[%s281_s13 + $0x10] sm:$0xff] %v944_v12  ;;  %v945_v17 = vmul.f32 %v1256_v9, %v940_v13 }
 0x370   : > { %946 = vst [vmem:[%s281_s13] sm:$0xff] %v942_v15  ;;  %v943_v18 = vmul.f32 %v1256_v9, %v938_v16 }
 0x371   : > { %949 = vst [vmem:[%s281_s13 + $0x18] sm:$0xff] %v945_v17 }
 0x372   : > { %947 = vst [vmem:[%s281_s13 + $0x8] sm:$0xff] %v943_v18 }
 0x373   : > { %1270 = shalt.err (!%p1267_p5)
}
 0x374   : > { %s1271_s30 = scalar_lea.hbm %s1535_s18, 512  ;;  %s1275_s12 = scalar_lea.hbm %s1589_s6, 1024 }
 0x375   : > { %p1272_p6 = scmp.ne.s32.totalorder %s1535_s18, %s1271_s30  ;;  %p1276_p10 = scmp.lt.u32.totalorder %s1535_s18, %s1589_s6 }
 0x376   : > { %p1277_p11 = scmp.lt.u32.totalorder %s1275_s12, %s1271_s30  ;;  %p1279_p13 = scmp.lt.u32.totalorder %s1271_s30, %s1535_s18 }
 0x377   : > { %p1273_p7 = pnand %p1272_p6, %p1416_p4 }
 0x378   : > { %p1278_p12 = por %p1277_p11, %p1276_p10 }
 0x379   : > { %p1274_p9 = pneg %p1273_p7 }
 0x37a   : > { %p1280_p0 = por %p1279_p13, %p1278_p12 }
 0x37c   : > { %p1281_p1 = pnand %p1280_p0, %p1274_p9 }
 0x37e   : > { %1284 = shalt.err (!%p1281_p1)
}
 0x37f   : > { %s1339_s16 = smov 128   ;;  %s1340_s17 = smov 8  }
 0x380   : > { %1177 = dma.vmem_to_hbm [thread:$0]  (%p1416_p4), %s1530_s14, 512, %s1535_s18, %s1537_s19, %s1339_s16, %s1339_s16, %s1340_s17  }
 0x381 PF: > { %p1183_p2 = scmp.ge.s32.totalorder %s1335_s26, 2  ;;  %s980_s24 = sand.u32 1, %s1315_s21  }
 0x382   : > { %s981_s20 = scalar_lea.sflag [#allocation3], %s980_s24 }
 0x383   : > { %p1180_p3 = pnand %p1183_p2, %p1423_p8 }
 0x385   : > { %1310 = dma.done.wait (!%p1180_p3), %s981_s20, 512  }
 0x386   : > { %1312 = vsyncadd (!%p1180_p3), %s981_s20, 4294966784  ;;  %s19_s26 = sadd.s32 1, %s1335_s26   ;;  %s1592_s21 = smov %s1319_s22 }
 0x387   : > { %p16_p5 = scmp.ge.s32.totalorder %s19_s26, 4   ;;  %s1593_s22 = smov %s1323_s23 }
 0x388   : > { %s1594_s23 = smov %s1429_s10  ;;  %s1595_s24 = smov %s1331_s25 }
 0x389   : > { %s1596_s25 = smov %s1598_s29  ;;  %18 = sbr.rel (!%p16_p5) target bundleno = 4 (0x4), region = 82 }
 0x390   :  { %986 = vsyncpa [#allocation3], 1 }
 0x391   :  { %988 = vsyncpa [#allocation3 + $0x1], 1 }

</bundles_post_ra>
